<compile_context>
chip_gen: v5e
topology: v5e:2x2
jax: 0.10.0
libtpu: 0.0.40
codegen_flags: <defaults>
</compile_context>

<pallas_src>
import functools

import jax
import jax.numpy as jnp
from jax.experimental import pallas as pl
from jax.experimental.pallas import tpu as pltpu

LANE = 128          # vreg lane width (last dim)
SUBLANE = 8         # vreg sublane width (second-to-last dim, f32)

TILE_M = 512        # tiled-fallback tile sizes (review: >= 512 each)
TILE_N = 512
TILE_K = 512

MAX_FUSED_BATCH_TILE = 256   # batch-block size for the fused path's grid


def _round_up(n: int, m: int) -> int:
    return ((n + m - 1) // m) * m


def _vmem_capacity_bytes() -> int:
    """Generation-aware VMEM capacity; conservative (v7x) fallback."""
    try:
        info = pltpu.get_tpu_info()
        cap = int(getattr(info, "vmem_capacity_bytes"))
        if cap > 0:
            return cap
    except Exception:
        pass
    return 64 * 1024 * 1024


# ---------------------------------------------------------------------------
# Fused whole-MLP kernel: one pallas_call, grid over batch tiles, weights resident.
# ---------------------------------------------------------------------------
def _fused_mlp_kernel(*refs, num_layers: int):
    """refs = (x_ref, w0_ref, b0_ref, ..., o_ref). Operands lane-dense (last dim % 128 == 0).

    x/weights are bf16 (MXU-native); accumulation is f32; padded columns stay exactly 0
    through bias-add / ReLU, so numerics match an un-padded reference.
    """
    x_ref = refs[0]
    o_ref = refs[-1]
    h = x_ref[...]                                  # bf16 (bt, in_p)
    for i in range(num_layers):
        w = refs[1 + 2 * i][...]                    # bf16 (k_p, n_p)
        b = refs[2 + 2 * i][...]                    # f32  (1, n_p), broadcasts over rows
        h = jnp.dot(h, w, preferred_element_type=jnp.float32) + b
        if i < num_layers - 1:                      # final Linear has no activation
            h = jnp.maximum(h, 0.0).astype(jnp.bfloat16)
    o_ref[...] = h.astype(o_ref.dtype)


def _forward_fused(padded_params, x, out_features, vmem_limit):
    batch, in_features = x.shape
    in_p = padded_params[0][0].shape[0]
    out_p = padded_params[-1][0].shape[1]

    bt = batch if batch <= MAX_FUSED_BATCH_TILE else MAX_FUSED_BATCH_TILE
    bt = _round_up(bt, SUBLANE)
    batch_p = _round_up(batch, bt)

    x_p = jnp.pad(x, ((0, batch_p - batch),
                      (0, in_p - in_features))).astype(jnp.bfloat16)

    flat_inputs = [x_p]
    in_specs = [pl.BlockSpec((bt, in_p), lambda i: (i, 0))]
    flops = 0
    bytes_accessed = x_p.size * 2 + batch_p * out_p * 4
    for w_p, b_p in padded_params:
        flat_inputs += [w_p, b_p]
        # Constant block index -> weights/biases are fetched once and stay VMEM-resident.
        in_specs.append(pl.BlockSpec(w_p.shape, lambda i: (0, 0)))
        in_specs.append(pl.BlockSpec(b_p.shape, lambda i: (0, 0)))
        flops += 2 * batch_p * w_p.shape[0] * w_p.shape[1]
        bytes_accessed += w_p.size * 2 + b_p.size * 4

    kernel = functools.partial(_fused_mlp_kernel, num_layers=len(padded_params))
    out = pl.pallas_call(
        kernel,
        out_shape=jax.ShapeDtypeStruct((batch_p, out_p), jnp.float32),
        grid_spec=pltpu.PrefetchScalarGridSpec(
            num_scalar_prefetch=0,
            grid=(batch_p // bt,),
            in_specs=in_specs,
            out_specs=pl.BlockSpec((bt, out_p), lambda i: (i, 0)),
        ),
        compiler_params=pltpu.CompilerParams(
            dimension_semantics=("parallel",),
            vmem_limit_bytes=vmem_limit),
        cost_estimate=pl.CostEstimate(
            flops=flops, transcendentals=0, bytes_accessed=bytes_accessed),
    )(*flat_inputs)
    return out[:batch, :out_features]


# ---------------------------------------------------------------------------
# Tiled fallback for large layers: grid=(M/tm, N/tn, K/tk), accumulate into o_ref.
# ---------------------------------------------------------------------------
def _tiled_linear_kernel(x_ref, w_ref, b_ref, o_ref, *, apply_relu: bool):
    k = pl.program_id(2)

    @pl.when(k == 0)
    def _():
        o_ref[...] = jnp.zeros_like(o_ref)

    # Output block index (i, j) is constant across the k axis, so o_ref is
    # VMEM-resident and acts as the f32 accumulator (no extra scratch needed).
    o_ref[...] += jnp.dot(x_ref[...], w_ref[...],
                          preferred_element_type=jnp.float32)

    @pl.when(k == pl.num_programs(2) - 1)
    def _():
        y = o_ref[...] + b_ref[...]          # bias + ReLU folded into finalize
        if apply_relu:
            y = jnp.maximum(y, 0.0)
        o_ref[...] = y


def _linear_tiled(x_p, w_p, b_p, apply_relu: bool, tm: int, vmem_limit: int):
    """Pipelined Linear(+ReLU) on already-padded bf16 operands, f32 output."""
    m_p, k_p = x_p.shape
    _, n_p = w_p.shape
    tn = TILE_N if n_p % TILE_N == 0 else LANE
    tk = TILE_K if k_p % TILE_K == 0 else LANE

    kernel = functools.partial(_tiled_linear_kernel, apply_relu=apply_relu)
    return pl.pallas_call(
        kernel,
        out_shape=jax.ShapeDtypeStruct((m_p, n_p), jnp.float32),
        grid_spec=pltpu.PrefetchScalarGridSpec(
            num_scalar_prefetch=0,
            grid=(m_p // tm, n_p // tn, k_p // tk),
            in_specs=[
                pl.BlockSpec((tm, tk), lambda i, j, k: (i, k)),
                pl.BlockSpec((tk, tn), lambda i, j, k: (k, j)),
                pl.BlockSpec((1, tn), lambda i, j, k: (0, j)),
            ],
            out_specs=pl.BlockSpec((tm, tn), lambda i, j, k: (i, j)),
        ),
        compiler_params=pltpu.CompilerParams(
            dimension_semantics=("parallel", "parallel", "arbitrary"),
            vmem_limit_bytes=vmem_limit),
    )(x_p, w_p, b_p)


def _forward_tiled(padded_params, x, out_features, vmem_limit):
    batch, in_features = x.shape
    in_p = padded_params[0][0].shape[0]

    tm = TILE_M if batch >= TILE_M else _round_up(batch, SUBLANE)
    m_p = _round_up(batch, tm)

    # Pad the activation ONCE; it stays padded (lane-dense) across all layers.
    h = jnp.pad(x, ((0, m_p - batch),
                    (0, in_p - in_features))).astype(jnp.bfloat16)

    n_layers = len(padded_params)
    for i, (w_p, b_p) in enumerate(padded_params):
        last = (i == n_layers - 1)
        y = _linear_tiled(h, w_p, b_p, apply_relu=not last, tm=tm,
                          vmem_limit=vmem_limit)
        h = y if last else y.astype(jnp.bfloat16)
    return h[:batch, :out_features]


# ---------------------------------------------------------------------------
# Parameter init (mirrors torch.nn.Linear default), one-time prep, forward builder.
# ---------------------------------------------------------------------------
def init_net_params(key, hidden, hidden_size, input_size=784, output_size=10):
    """uniform(-1/sqrt(fan_in), 1/sqrt(fan_in)); weights stored as (in, out)."""
    if hidden == 0:
        dims = [(input_size, output_size)]
    else:
        dims = [(input_size, hidden_size)]
        dims += [(hidden_size, hidden_size)] * (hidden - 1)
        dims += [(hidden_size, output_size)]

    params = []
    for (fan_in, fan_out) in dims:
        key, kw, kb = jax.random.split(key, 3)
        bound = 1.0 / (fan_in ** 0.5)
        w = jax.random.uniform(kw, (fan_in, fan_out), jnp.float32, -bound, bound)
        b = jax.random.uniform(kb, (1, fan_out), jnp.float32, -bound, bound)
        params.append((w, b))
    return params


def prepare_net_params(params, input_size, force_mode=None):
    """One-time prep: choose fused vs tiled path, zero-pad + cast weights to bf16."""
    vmem_cap = _vmem_capacity_bytes()
    budget = int(vmem_cap * 0.6)   # headroom for Mosaic internal scratch, double-buffers

    # Conservative fused-path footprint estimate (weights counted x2 for buffering).
    in_p = _round_up(input_size, LANE)
    prev = in_p
    widest = in_p
    fused_bytes = 0
    for (w, _b) in params:
        out_p = _round_up(w.shape[1], LANE)
        fused_bytes += 2 * (prev * out_p * 2) + out_p * 4     # bf16 W (x2) + f32 b
        widest = max(widest, out_p)
        prev = out_p
    out_p_last = prev
    bt = MAX_FUSED_BATCH_TILE
    fused_bytes += 2 * bt * in_p * 2          # double-buffered bf16 x block
    fused_bytes += 2 * bt * out_p_last * 4    # double-buffered f32 out block
    fused_bytes += 3 * bt * widest * 4        # live intermediate activations

    mode = force_mode if force_mode is not None else (
        "fused" if fused_bytes <= budget else "tiled")
    pad_to = LANE if mode == "fused" else TILE_K

    padded = []
    prev_p = _round_up(input_size, pad_to)
    for (w, b) in params:
        fan_in, fan_out = w.shape
        out_pp = _round_up(fan_out, pad_to)
        w_p = jnp.pad(w, ((0, prev_p - fan_in), (0, out_pp - fan_out))).astype(jnp.bfloat16)
        b_p = jnp.pad(b, ((0, 0), (0, out_pp - fan_out))).astype(jnp.float32)
        padded.append((w_p, b_p))
        prev_p = out_pp

    fused_limit = int(min(vmem_cap - (2 << 20), fused_bytes + (16 << 20)))
    tiled_limit = int(min(vmem_cap - (2 << 20), 32 << 20))

    return {
        "mode": mode,
        "params": tuple(padded),
        "out_features": params[-1][0].shape[1],
        "fused_vmem_limit": fused_limit,
        "tiled_vmem_limit": tiled_limit,
    }


def make_net_forward(prepared):
    mode = prepared["mode"]
    out_features = int(prepared["out_features"])
    fused_limit = int(prepared["fused_vmem_limit"])
    tiled_limit = int(prepared["tiled_vmem_limit"])
    padded_params = prepared["params"]

    @jax.jit
    def fwd(x, pp):
        if mode == "fused":
            return _forward_fused(pp, x, out_features, fused_limit)
        return _forward_tiled(pp, x, out_features, tiled_limit)

    return lambda x: fwd(x, padded_params)


def net_forward_ref(params, x):
    """Pure-JAX reference (bf16 MXU operands, f32 accumulation) for correctness check."""
    h = x
    n = len(params)
    for i, (w, b) in enumerate(params):
        h = jnp.dot(h.astype(jnp.bfloat16), w.astype(jnp.bfloat16),
                    preferred_element_type=jnp.float32) + b
        if i < n - 1:
            h = jnp.maximum(h, 0.0)
    return h


if __name__ == "__main__":
    # Small configuration consistent with the module's __init__.
    hidden = 2          # number of hidden (Linear+ReLU) blocks
    hidden_size = 32
    input_size = 784
    output_size = 10
    batch = 8

    key = jax.random.PRNGKey(0)
    key, kx = jax.random.split(key)
    x = jax.random.normal(kx, (batch, input_size), jnp.float32)
    params = init_net_params(key, hidden, hidden_size, input_size, output_size)

    # Fused single-kernel path (used at these small shapes).
    prepared = prepare_net_params(params, input_size)
    fwd = make_net_forward(prepared)
    out = jax.block_until_ready(fwd(x))
    ref = net_forward_ref(params, x)
    assert out.shape == (batch, output_size)
    assert jnp.allclose(out, ref, atol=2e-2, rtol=2e-2)

    # hidden == 0 case: single Linear, no ReLU.
    params0 = init_net_params(jax.random.PRNGKey(1), 0, hidden_size,
                              input_size, output_size)
    prepared0 = prepare_net_params(params0, input_size)
    fwd0 = make_net_forward(prepared0)
    out0 = jax.block_until_ready(fwd0(x))
    ref0 = net_forward_ref(params0, x)
    assert out0.shape == (batch, output_size)
    assert jnp.allclose(out0, ref0, atol=2e-2, rtol=2e-2)

    # Tiled fallback path (forced) on a wider net / bigger batch.
    paramsL = init_net_params(jax.random.PRNGKey(2), 1, 1024,
                              input_size, output_size)
    preparedL = prepare_net_params(paramsL, input_size, force_mode="tiled")
    fwdL = make_net_forward(preparedL)
    xl = jax.random.normal(jax.random.PRNGKey(3), (64, input_size), jnp.float32)
    outL = jax.block_until_ready(fwdL(xl))
    refL = net_forward_ref(paramsL, xl)
    assert outL.shape == (64, output_size)
    assert jnp.allclose(outL, refL, atol=2e-2, rtol=2e-2)

    print("KERNEL_OK")
</pallas_src>

<mosaic_0001>
module attributes {stable_mosaic.version = 11 : i64} {
  func.func @_fused_mlp_kernel(%arg0: i32, %arg1: memref<8x896xbf16, #tpu.memory_space<vmem>>, %arg2: memref<896x128xbf16, #tpu.memory_space<vmem>>, %arg3: memref<1x128xf32, #tpu.memory_space<vmem>>, %arg4: memref<128x128xbf16, #tpu.memory_space<vmem>>, %arg5: memref<1x128xf32, #tpu.memory_space<vmem>>, %arg6: memref<128x128xbf16, #tpu.memory_space<vmem>>, %arg7: memref<1x128xf32, #tpu.memory_space<vmem>>, %arg8: memref<8x128xf32, #tpu.memory_space<vmem>>) attributes {dimension_semantics = [#tpu.dimension_semantics<parallel>], iteration_bounds = array<i64: 1>, scalar_prefetch = 0 : i64, scratch_operands = 0 : i64, tpu.core_type = #tpu.core_type<tc>, window_params = [{transform_indices = @transform_0, window_bounds = array<i64: 8, 896>}, {pipeline_mode = #tpu.pipeline_mode<synchronous>, transform_indices = @transform_1, window_bounds = array<i64: 896, 128>}, {pipeline_mode = #tpu.pipeline_mode<synchronous>, transform_indices = @transform_2, window_bounds = array<i64: 1, 128>}, {pipeline_mode = #tpu.pipeline_mode<synchronous>, transform_indices = @transform_3, window_bounds = array<i64: 128, 128>}, {pipeline_mode = #tpu.pipeline_mode<synchronous>, transform_indices = @transform_4, window_bounds = array<i64: 1, 128>}, {pipeline_mode = #tpu.pipeline_mode<synchronous>, transform_indices = @transform_5, window_bounds = array<i64: 128, 128>}, {pipeline_mode = #tpu.pipeline_mode<synchronous>, transform_indices = @transform_6, window_bounds = array<i64: 1, 128>}, {transform_indices = @transform_7, window_bounds = array<i64: 8, 128>}]} {
    %c0 = arith.constant 0 : index
    %c0_0 = arith.constant 0 : index
    %0 = vector.load %arg1[%c0, %c0_0] : memref<8x896xbf16, #tpu.memory_space<vmem>>, vector<8x896xbf16>
    %c0_1 = arith.constant 0 : index
    %c0_2 = arith.constant 0 : index
    %1 = vector.load %arg2[%c0_1, %c0_2] : memref<896x128xbf16, #tpu.memory_space<vmem>>, vector<896x128xbf16>
    %c0_3 = arith.constant 0 : index
    %c0_4 = arith.constant 0 : index
    %2 = vector.load %arg3[%c0_3, %c0_4] : memref<1x128xf32, #tpu.memory_space<vmem>>, vector<1x128xf32>
    %cst = arith.constant dense<0.000000e+00> : vector<8x128xf32>
    %3 = tpu.matmul %0, %1, %cst {dimension_numbers = #tpu.dot_dimension_numbers<[1], [0], [0], [1], [0, 0, 1, 1], [], []>} : vector<8x896xbf16>, vector<896x128xbf16>, vector<8x128xf32> -> vector<8x128xf32>
    %4 = vector.broadcast %2 : vector<1x128xf32> to vector<8x128xf32>
    %5 = arith.addf %3, %4 : vector<8x128xf32>
    %cst_5 = arith.constant 0.000000e+00 : f32
    %6 = vector.broadcast %cst_5 : f32 to vector<8x128xf32>
    %7 = arith.maximumf %5, %6 : vector<8x128xf32>
    %8 = arith.truncf %7 : vector<8x128xf32> to vector<8x128xbf16>
    %c0_6 = arith.constant 0 : index
    %c0_7 = arith.constant 0 : index
    %9 = vector.load %arg4[%c0_6, %c0_7] : memref<128x128xbf16, #tpu.memory_space<vmem>>, vector<128x128xbf16>
    %c0_8 = arith.constant 0 : index
    %c0_9 = arith.constant 0 : index
    %10 = vector.load %arg5[%c0_8, %c0_9] : memref<1x128xf32, #tpu.memory_space<vmem>>, vector<1x128xf32>
    %cst_10 = arith.constant dense<0.000000e+00> : vector<8x128xf32>
    %11 = tpu.matmul %8, %9, %cst_10 {dimension_numbers = #tpu.dot_dimension_numbers<[1], [0], [0], [1], [0, 0, 1, 1], [], []>} : vector<8x128xbf16>, vector<128x128xbf16>, vector<8x128xf32> -> vector<8x128xf32>
    %12 = vector.broadcast %10 : vector<1x128xf32> to vector<8x128xf32>
    %13 = arith.addf %11, %12 : vector<8x128xf32>
    %cst_11 = arith.constant 0.000000e+00 : f32
    %14 = vector.broadcast %cst_11 : f32 to vector<8x128xf32>
    %15 = arith.maximumf %13, %14 : vector<8x128xf32>
    %16 = arith.truncf %15 : vector<8x128xf32> to vector<8x128xbf16>
    %c0_12 = arith.constant 0 : index
    %c0_13 = arith.constant 0 : index
    %17 = vector.load %arg6[%c0_12, %c0_13] : memref<128x128xbf16, #tpu.memory_space<vmem>>, vector<128x128xbf16>
    %c0_14 = arith.constant 0 : index
    %c0_15 = arith.constant 0 : index
    %18 = vector.load %arg7[%c0_14, %c0_15] : memref<1x128xf32, #tpu.memory_space<vmem>>, vector<1x128xf32>
    %cst_16 = arith.constant dense<0.000000e+00> : vector<8x128xf32>
    %19 = tpu.matmul %16, %17, %cst_16 {dimension_numbers = #tpu.dot_dimension_numbers<[1], [0], [0], [1], [0, 0, 1, 1], [], []>} : vector<8x128xbf16>, vector<128x128xbf16>, vector<8x128xf32> -> vector<8x128xf32>
    %20 = vector.broadcast %18 : vector<1x128xf32> to vector<8x128xf32>
    %21 = arith.addf %19, %20 : vector<8x128xf32>
    %c0_17 = arith.constant 0 : index
    %c0_18 = arith.constant 0 : index
    %22 = vector.load %arg8[%c0_17, %c0_18] : memref<8x128xf32, #tpu.memory_space<vmem>>, vector<8x128xf32>
    tpu.vector_store %arg8[%c0_17, %c0_18], %21 {strides = array<i32>} : memref<8x128xf32, #tpu.memory_space<vmem>>, vector<8x128xf32>,
    return
  }
  func.func @transform_0(%arg0: i32) -> (i32, i32) {
    %c0_i32 = arith.constant 0 : i32
    %c0_i32_0 = arith.constant 0 : i32
    return %arg0, %c0_i32 : i32, i32
  }
  func.func @transform_1(%arg0: i32) -> (i32, i32) {
    %c0_i32 = arith.constant 0 : i32
    %c0_i32_0 = arith.constant 0 : i32
    %c0_i32_1 = arith.constant 0 : i32
    return %c0_i32, %c0_i32_0 : i32, i32
  }
  func.func @transform_2(%arg0: i32) -> (i32, i32) {
    %c0_i32 = arith.constant 0 : i32
    %c0_i32_0 = arith.constant 0 : i32
    %c0_i32_1 = arith.constant 0 : i32
    return %c0_i32, %c0_i32_0 : i32, i32
  }
  func.func @transform_3(%arg0: i32) -> (i32, i32) {
    %c0_i32 = arith.constant 0 : i32
    %c0_i32_0 = arith.constant 0 : i32
    %c0_i32_1 = arith.constant 0 : i32
    return %c0_i32, %c0_i32_0 : i32, i32
  }
  func.func @transform_4(%arg0: i32) -> (i32, i32) {
    %c0_i32 = arith.constant 0 : i32
    %c0_i32_0 = arith.constant 0 : i32
    %c0_i32_1 = arith.constant 0 : i32
    return %c0_i32, %c0_i32_0 : i32, i32
  }
  func.func @transform_5(%arg0: i32) -> (i32, i32) {
    %c0_i32 = arith.constant 0 : i32
    %c0_i32_0 = arith.constant 0 : i32
    %c0_i32_1 = arith.constant 0 : i32
    return %c0_i32, %c0_i32_0 : i32, i32
  }
  func.func @transform_6(%arg0: i32) -> (i32, i32) {
    %c0_i32 = arith.constant 0 : i32
    %c0_i32_0 = arith.constant 0 : i32
    %c0_i32_1 = arith.constant 0 : i32
    return %c0_i32, %c0_i32_0 : i32, i32
  }
  func.func @transform_7(%arg0: i32) -> (i32, i32) {
    %c0_i32 = arith.constant 0 : i32
    %c0_i32_0 = arith.constant 0 : i32
    return %arg0, %c0_i32 : i32, i32
  }
}

</mosaic_0001>

<bundles_post_ra>
// kernel: fwd.1
= control target key start
LH: loop header
LB: loop body
LE: loop exit
PB: predicated region body
PF: predicated region fallthrough
CT: control target
= control target key end

     0   :  { %12 = vsyncpa [#allocation3], 0  ;;  %s1337_s0 = inlined_call_operand.vmem [shape: bf16[8,896], index: 0, kind: input, shape index: {}]   ;;  %s1338_s1 = inlined_call_operand.hbm [shape: bf16[896,128], index: 1, kind: input, shape index: {}]   ;;  %s1339_s2 = inlined_call_operand.vmem [shape: f32[1,128], index: 2, kind: input, shape index: {}]   ;;  %s1340_s3 = inlined_call_operand.vmem [shape: bf16[128,128], index: 3, kind: input, shape index: {}]   ;;  %s1341_s4 = inlined_call_operand.vmem [shape: f32[1,128], index: 4, kind: input, shape index: {}]   ;;  %s1342_s5 = inlined_call_operand.vmem [shape: bf16[128,128], index: 5, kind: input, shape index: {}]   ;;  %s1343_s6 = inlined_call_operand.vmem [shape: f32[1,128], index: 6, kind: input, shape index: {}]   ;;  %s1344_s7 = inlined_call_operand.hbm [shape: f32[8,128], index: 7, kind: output, shape index: {}]  }
   0x1   :  { %13 = vsyncpa [#allocation4], 0  ;;  %s20_s26 = sshll.u32 %s1338_s1, 4  ;;  %s1218_s27 = smov [#allocation2]   ;;  %s21_s26 = int_to_ptr.hbm [resolvable:$true] %s20_s26 }
   0x2   :  { %s22_s28 = sshll.u32 %s1218_s27, 4  ;;  %s1219_s29 = smov 64   ;;  %s23_s28 = int_to_ptr.vmem [resolvable:$true] %s22_s28 }
   0x3   :  { %s1220_s30 = smov 4  }
   0x4   :  { %28 = dma.hbm_to_vmem [thread:$0]  %s21_s26, 7168, %s23_s28, [#allocation3], %s1219_s29, %s1219_s29, %s1220_s30  }
   0x5   :  { %1214 = dma.done.wait [#allocation3], 7168  }
   0x6   :  { %1215 = vsyncadd [#allocation3], 4294960128  ;;  %v1094_v0 = vld [vmem:[#allocation2 + $0x38] sm:$0xff]  ;;  %v1093_v3 = vld [vmem:[#allocation2 + $0x30] sm:$0xff]  ;;  %s1221_s25 = smov [#allocation5]  }
   0x7   :  { %v1102_v1 = vld [vmem:[#allocation2 + $0x78] sm:$0xff]  ;;  %524 = vmatpush.bf16.msra.mxu0 %v1094_v0  ;;  %v1101_v4 = vld [vmem:[#allocation2 + $0x70] sm:$0xff]  ;;  %v1092_v7 = vld [vmem:[#allocation2 + $0x28] sm:$0xff]  ;;  %s787_s26 = sshll.u32 %s1221_s25, 4  ;;  %s788_s26 = int_to_ptr.vmem [resolvable:$true] %s787_s26 }
   0x8   :  { %v1110_v2 = vld [vmem:[#allocation2 + $0xb8] sm:$0xff]  ;;  %537 = vmatpush.bf16.msra.mxu1 %v1102_v1  ;;  %v1109_v5 = vld [vmem:[#allocation2 + $0xb0] sm:$0xff]  ;;  %v1100_v8 = vld [vmem:[#allocation2 + $0x68] sm:$0xff] }
   0x9   :  { %550 = vmatpush.bf16.msra.mxu2 %v1110_v2  ;;  %v1118_v6 = vld [vmem:[#allocation2 + $0xf8] sm:$0xff]  ;;  %v1108_v9 = vld [vmem:[#allocation2 + $0xa8] sm:$0xff]  ;;  %v1117_v10 = vld [vmem:[#allocation2 + $0xf0] sm:$0xff] }
   0xa   :  { %563 = vmatpush.bf16.msra.mxu3 %v1118_v6  ;;  %v1091_v11 = vld [vmem:[#allocation2 + $0x20] sm:$0xff]  ;;  %v1116_v14 = vld [vmem:[#allocation2 + $0xe8] sm:$0xff]  ;;  %v1090_v15 = vld [vmem:[#allocation2 + $0x18] sm:$0xff] }
   0xb   :  { %525 = vmatpush.bf16.msra.mxu0 %v1093_v3  ;;  %v1099_v12 = vld [vmem:[#allocation2 + $0x60] sm:$0xff]  ;;  %v1098_v16 = vld [vmem:[#allocation2 + $0x58] sm:$0xff]  ;;  %v1089_v19 = vld [vmem:[#allocation2 + $0x10] sm:$0xff] }
   0xc   :  { %538 = vmatpush.bf16.msra.mxu1 %v1101_v4  ;;  %v1107_v13 = vld [vmem:[#allocation2 + $0xa0] sm:$0xff]  ;;  %v1106_v17 = vld [vmem:[#allocation2 + $0x98] sm:$0xff]  ;;  %v1097_v20 = vld [vmem:[#allocation2 + $0x50] sm:$0xff] }
   0xd   :  { %551 = vmatpush.bf16.msra.mxu2 %v1109_v5  ;;  %v1115_v18 = vld [vmem:[#allocation2 + $0xe0] sm:$0xff]  ;;  %v1105_v21 = vld [vmem:[#allocation2 + $0x90] sm:$0xff]  ;;  %v1114_v22 = vld [vmem:[#allocation2 + $0xd8] sm:$0xff] }
   0xe   :  { %564 = vmatpush.bf16.msra.mxu3 %v1117_v10  ;;  %v1088_v23 = vld [vmem:[#allocation2 + $0x8] sm:$0xff]  ;;  %v43_v25 = vld [vmem:[%s1337_s0] sm:$0xff]  ;;  %v1113_v27 = vld [vmem:[#allocation2 + $0xd0] sm:$0xff] }
   0xf   :  { %526 = vmatpush.bf16.msra.mxu0 %v1092_v7  ;;  %v1096_v24 = vld [vmem:[#allocation2 + $0x48] sm:$0xff]  ;;  %v167_v29 = vunpack.c.l.b16 %v43_v25  ;;  %v1087_v30 = vld [vmem:[#allocation2] sm:$0xff]  ;;  %v168_v33 = vunpack.c.h.b16 %v43_v25  ;;  %v1126_v35 = vld [vmem:[#allocation2 + $0x138] sm:$0xff] }
  0x10   :  { %539 = vmatpush.bf16.msra.mxu1 %v1100_v8  ;;  %v1104_v26 = vld [vmem:[#allocation2 + $0x88] sm:$0xff]  ;;  %v1095_v31 = vld [vmem:[#allocation2 + $0x40] sm:$0xff]  ;;  %v1134_v36 = vld [vmem:[#allocation2 + $0x178] sm:$0xff] }
  0x11   :  { %552 = vmatpush.bf16.msra.mxu2 %v1108_v9  ;;  %v44_v28 = vld [vmem:[%s1337_s0 + $0x8] sm:$0xff]  ;;  %v1103_v34 = vld [vmem:[#allocation2 + $0x80] sm:$0xff]  ;;  %v1142_v37 = vld [vmem:[#allocation2 + $0x1b8] sm:$0xff]  ;;  %v174_v38 = vpack.c.b16 %v167_v29, %v167_v29  ;;  %v175_v41 = vpack.c.b16 %v168_v33, %v168_v33 }
  0x12   :  { %565 = vmatpush.bf16.msra.mxu3 %v1116_v14  ;;  %v169_v32 = vunpack.c.l.b16 %v44_v28  ;;  %v1112_v39 = vld [vmem:[#allocation2 + $0xc8] sm:$0xff]  ;;  %v1125_v42 = vld [vmem:[#allocation2 + $0x130] sm:$0xff]  ;;  %v1111_v45 = vld [vmem:[#allocation2 + $0xc0] sm:$0xff]  ;;  %v170_v46 = vunpack.c.h.b16 %v44_v28 }
  0x13   :  { %527 = vmatpush.bf16.msra.mxu0 %v1091_v11  ;;  %v1133_v43 = vld [vmem:[#allocation2 + $0x170] sm:$0xff]  ;;  %v1124_v47 = vld [vmem:[#allocation2 + $0x128] sm:$0xff]  ;;  %v1123_v51 = vld [vmem:[#allocation2 + $0x120] sm:$0xff] }
  0x14   :  { %540 = vmatpush.bf16.msra.mxu1 %v1099_v12  ;;  %v176_v40 = vpack.c.b16 %v169_v32, %v169_v32  ;;  %v1141_v44 = vld [vmem:[#allocation2 + $0x1b0] sm:$0xff]  ;;  %v1132_v48 = vld [vmem:[#allocation2 + $0x168] sm:$0xff]  ;;  %v177_v50 = vpack.c.b16 %v170_v46, %v170_v46  ;;  %v1131_v52 = vld [vmem:[#allocation2 + $0x160] sm:$0xff] }
  0x15   :  { %553 = vmatpush.bf16.msra.mxu2 %v1107_v13  ;;  %v1140_v49 = vld [vmem:[#allocation2 + $0x1a8] sm:$0xff]  ;;  %v1139_v53 = vld [vmem:[#allocation2 + $0x1a0] sm:$0xff]  ;;  %v1122_v54 = vld [vmem:[#allocation2 + $0x118] sm:$0xff] }
  0x16   :  { %566 = vmatpush.bf16.msra.mxu3 %v1115_v18  ;;  %v1130_v55 = vld [vmem:[#allocation2 + $0x158] sm:$0xff]  ;;  %v1121_v57 = vld [vmem:[#allocation2 + $0x110] sm:$0xff]  ;;  %v1120_v60 = vld [vmem:[#allocation2 + $0x108] sm:$0xff] }
  0x17   :  { %528 = vmatpush.bf16.msra.mxu0 %v1090_v15  ;;  %v1138_v56 = vld [vmem:[#allocation2 + $0x198] sm:$0xff]  ;;  %v1129_v58 = vld [vmem:[#allocation2 + $0x150] sm:$0xff]  ;;  %v1128_v62 = vld [vmem:[#allocation2 + $0x148] sm:$0xff] }
  0x18   :  { %541 = vmatpush.bf16.msra.mxu1 %v1098_v16  ;;  %v1137_v59 = vld [vmem:[#allocation2 + $0x190] sm:$0xff]  ;;  %v1136_v63 = vld [vmem:[#allocation2 + $0x188] sm:$0xff]  ;;  %v46_v0 = vld [vmem:[%s1337_s0 + $0x18] sm:$0xf] }
  0x19   :  { %554 = vmatpush.bf16.msra.mxu2 %v1106_v17  ;;  %v45_v61 = vld [vmem:[%s1337_s0 + $0x10] sm:$0xff]  ;;  %v1119_v2 = vld [vmem:[#allocation2 + $0x100] sm:$0xff]  ;;  %v173_v4 = vunpack.c.l.b16 %v46_v0  ;;  %v1150_v10 = vld [vmem:[%s1340_s3 + $0x38] sm:$0xff] }
  0x1a   :  { %567 = vmatpush.bf16.msra.mxu3 %v1114_v22  ;;  %v171_v1 = vunpack.c.l.b16 %v45_v61  ;;  %v172_v3 = vunpack.c.h.b16 %v45_v61  ;;  %v1127_v5 = vld [vmem:[#allocation2 + $0x140] sm:$0xff]  ;;  %v1149_v11 = vld [vmem:[%s1340_s3 + $0x30] sm:$0xff]  ;;  %v1148_v12 = vld [vmem:[%s1340_s3 + $0x28] sm:$0xff] }
  0x1b   :  { %529 = vmatpush.bf16.msra.mxu0 %v1089_v19  ;;  %v1135_v6 = vld [vmem:[#allocation2 + $0x180] sm:$0xff]  ;;  %v180_v9 = vpack.c.b16 %v173_v4, %v173_v4  ;;  %v1146_v14 = vld [vmem:[%s1340_s3 + $0x18] sm:$0xff]  ;;  %v1145_v15 = vld [vmem:[%s1340_s3 + $0x10] sm:$0xff] }
  0x1c   :  { %542 = vmatpush.bf16.msra.mxu1 %v1097_v20  ;;  %v178_v7 = vpack.c.b16 %v171_v1, %v171_v1  ;;  %v179_v8 = vpack.c.b16 %v172_v3, %v172_v3  ;;  %v1147_v13 = vld [vmem:[%s1340_s3 + $0x20] sm:$0xff]  ;;  %v1144_v18 = vld [vmem:[%s1340_s3 + $0x8] sm:$0xff] }
  0x1d   :  { %555 = vmatpush.bf16.msra.mxu2 %v1105_v21  ;;  %v1143_v19 = vld [vmem:[%s1340_s3] sm:$0xff]  ;;  %v1156_v29 = vld [vmem:[%s1342_s5 + $0x28] sm:$0xff] }
  0x1e   :  { %568 = vmatpush.bf16.msra.mxu3 %v1113_v27  ;;  %v1155_v32 = vld [vmem:[%s1342_s5 + $0x20] sm:$0xff] }
  0x1f   :  { %530 = vmatpush.bf16.msra.mxu0 %v1088_v23  ;;  %v1158_v23 = vld [vmem:[%s1342_s5 + $0x38] sm:$0xff] }
  0x20   :  { %543 = vmatpush.bf16.msra.mxu1 %v1096_v24  ;;  %v1163_v24 = vld [vmem:[%s1339_s2] ss:$0 sm:$0xff] }
  0x21   :  { %556 = vmatpush.bf16.msra.mxu2 %v1104_v26  ;;  %v1157_v26 = vld [vmem:[%s1342_s5 + $0x30] sm:$0xff] }
  0x22   :  { %569 = vmatpush.bf16.msra.mxu3 %v1112_v39 }
  0x23   :  { %531 = vmatpush.bf16.msra.mxu0 %v1087_v30 }
  0x24   :  { %544 = vmatpush.bf16.msra.mxu1 %v1095_v31 }
  0x25   :  { %557 = vmatpush.bf16.msra.mxu2 %v1103_v34  ;;  %v1154_v34 = vld [vmem:[%s1342_s5 + $0x18] sm:$0xff] }
  0x26   :  { %532 = vmatmul.bf16.vlgmr.msra.gmra.mxu0 %v174_v38  ;;  %570 = vmatpush.bf16.msra.mxu3 %v1111_v45  ;;  %v1153_v38 = vld [vmem:[%s1342_s5 + $0x10] sm:$0xff] }
  0x27   :  { %576 = vmatpush.bf16.msrb.mxu0 %v1126_v35  ;;  %545 = vmatmul.bf16.vlgmr.msra.gmra.mxu1 %v175_v41 }
  0x28   :  { %589 = vmatpush.bf16.msrb.mxu1 %v1134_v36  ;;  %558 = vmatmul.bf16.vlgmr.msra.gmra.mxu2 %v176_v40 }
  0x29   :  { %602 = vmatpush.bf16.msrb.mxu2 %v1142_v37  ;;  %571 = vmatmul.bf16.vlgmr.msra.gmra.mxu3 %v177_v50  ;;  %v1164_v50 = vld [vmem:[%s1341_s4] ss:$0 sm:$0xff] }
  0x2a   :  { %685 = vmatpush.bf16.msrb.mxu3 %v1150_v10 }
  0x2b   :  { %577 = vmatpush.bf16.msrb.mxu0 %v1125_v42 }
  0x2c   :  { %590 = vmatpush.bf16.msrb.mxu1 %v1133_v43 }
  0x2d   :  { %603 = vmatpush.bf16.msrb.mxu2 %v1141_v44 }
  0x2e   :  { %686 = vmatpush.bf16.msrb.mxu3 %v1149_v11 }
  0x2f   :  { %578 = vmatpush.bf16.msrb.mxu0 %v1124_v47 }
  0x30   :  { %591 = vmatpush.bf16.msrb.mxu1 %v1132_v48  ;;  %v1152_v48 = vld [vmem:[%s1342_s5 + $0x8] sm:$0xff] }
  0x31   :  { %604 = vmatpush.bf16.msrb.mxu2 %v1140_v49  ;;  %v1151_v49 = vld [vmem:[%s1342_s5] sm:$0xff]  ;;  %s789_s5 = sshll.u32 %s1344_s7, 4  ;;  %s790_s5 = int_to_ptr.hbm [resolvable:$true] %s789_s5 }
  0x32   :  { %687 = vmatpush.bf16.msrb.mxu3 %v1148_v12 }
  0x33   :  { %579 = vmatpush.bf16.msrb.mxu0 %v1123_v51 }
  0x34   :  { %592 = vmatpush.bf16.msrb.mxu1 %v1131_v52 }
  0x35   :  { %605 = vmatpush.bf16.msrb.mxu2 %v1139_v53 }
  0x36   :  { %688 = vmatpush.bf16.msrb.mxu3 %v1147_v13 }
  0x37   :  { %580 = vmatpush.bf16.msrb.mxu0 %v1122_v54 }
  0x38   :  { %593 = vmatpush.bf16.msrb.mxu1 %v1130_v55 }
  0x39   :  { %606 = vmatpush.bf16.msrb.mxu2 %v1138_v56  ;;  %v1165_v56 = vld [vmem:[%s1343_s6] ss:$0 sm:$0xff] }
  0x3a   :  { %689 = vmatpush.bf16.msrb.mxu3 %v1146_v14 }
  0x3b   :  { %581 = vmatpush.bf16.msrb.mxu0 %v1121_v57 }
  0x3c   :  { %594 = vmatpush.bf16.msrb.mxu1 %v1129_v58 }
  0x3d   :  { %607 = vmatpush.bf16.msrb.mxu2 %v1137_v59 }
  0x3e   :  { %690 = vmatpush.bf16.msrb.mxu3 %v1145_v15 }
  0x3f   :  { %582 = vmatpush.bf16.msrb.mxu0 %v1120_v60 }
  0x40   :  { %595 = vmatpush.bf16.msrb.mxu1 %v1128_v62 }
  0x41   :  { %608 = vmatpush.bf16.msrb.mxu2 %v1136_v63 }
  0x42   :  { %691 = vmatpush.bf16.msrb.mxu3 %v1144_v18 }
  0x43   :  { %583 = vmatpush.bf16.msrb.mxu0 %v1119_v2 }
  0x44   :  { %596 = vmatpush.bf16.msrb.mxu1 %v1127_v5 }
  0x45   :  { %609 = vmatpush.bf16.msrb.mxu2 %v1135_v6 }
  0x46   :  { %584 = vmatmul.bf16.vlgmr.msrb.gmra.mxu0 %v178_v7  ;;  %692 = vmatpush.bf16.msrb.mxu3 %v1143_v19 }
  0x47   :  { %597 = vmatmul.bf16.vlgmr.msrb.gmra.mxu1 %v179_v8  ;;  %768 = vmatpush.bf16.msra.mxu0 %v1158_v23 }
  0x48   :  { %610 = vmatmul.bf16.vlgmr.msrb.gmra.mxu2 %v180_v9 }
  0x4b   :  { %769 = vmatpush.bf16.msra.mxu0 %v1157_v26 }
  0x4f   :  { %770 = vmatpush.bf16.msra.mxu0 %v1156_v29 }
  0x53   :  { %771 = vmatpush.bf16.msra.mxu0 %v1155_v32 }
  0x57   :  { %772 = vmatpush.bf16.msra.mxu0 %v1154_v34 }
  0x5b   :  { %773 = vmatpush.bf16.msra.mxu0 %v1153_v38 }
  0x5f   :  { %774 = vmatpush.bf16.msra.mxu0 %v1152_v48 }
  0x63   :  { %775 = vmatpush.bf16.msra.mxu0 %v1151_v49 }
  0xa3   :  { %v533_v16 = vpop.f32.mrf.mxu0 }
  0xa4   :  { %v546_v17 = vpop.f32.mrf.mxu1  ;;  %v534_v28 = vadd.f32 %v1163_v24, %v533_v16 }
  0xa6   :  { %v547_v30 = vadd.f32 %v546_v17, %v534_v28 }
  0xab   :  { %v559_v20 = vpop.f32.mrf.mxu2  ;;  %v535_v21 = vpop.f32.mrf.mxu0 }
  0xac   :  { %v548_v22 = vpop.f32.mrf.mxu1  ;;  %v572_v25 = vpop.f32.mrf.mxu3  ;;  %v560_v33 = vadd.f32 %v559_v20, %v547_v30 }
  0xae   :  { %v573_v35 = vadd.f32 %v572_v25, %v560_v33 }
  0xb3   :  { %v561_v27 = vpop.f32.mrf.mxu2 }
  0xb4   :  { %v574_v31 = vpop.f32.mrf.mxu3 }
  0xc3   :  { %v585_v36 = vpop.f32.mrf.mxu0 }
  0xc4   :  { %v598_v37 = vpop.f32.mrf.mxu1  ;;  %v586_v39 = vadd.f32 %v585_v36, %v573_v35 }
  0xc6   :  { %v599_v40 = vadd.f32 %v598_v37, %v586_v39 }
  0xcb   :  { %v611_v41 = vpop.f32.mrf.mxu2  ;;  %v587_v43 = vpop.f32.mrf.mxu0 }
  0xcc   :  { %v612_v42 = vadd.f32 %v611_v41, %v599_v40  ;;  %v600_v44 = vpop.f32.mrf.mxu1 }
  0xce   :  { %v615_v45 = vmax.f32 %v612_v42, 0.0 }
  0xd0   :  { %v616_v46 = vpack.c.bf16 %v615_v45, %v615_v45 }
  0xd2   :  { %693 = vmatmul.bf16.vlgmr.msrb.gmra.mxu3 %v616_v46 }
  0xd3   :  { %v613_v47 = vpop.f32.mrf.mxu2 }
 0x155   :  { %v694_v51 = vpop.f32.mrf.mxu3 }
 0x156   :  { %v695_v52 = vadd.f32 %v1164_v50, %v694_v51 }
 0x158   :  { %v698_v53 = vmax.f32 %v695_v52, 0.0 }
 0x15a   :  { %v699_v54 = vpack.c.bf16 %v698_v53, %v698_v53 }
 0x15c   :  { %776 = vmatmul.bf16.vlgmr.msra.gmra.mxu0 %v699_v54 }
 0x15d   :  { %v696_v55 = vpop.f32.mrf.mxu3 }
 0x1d9   :  { %v777_v57 = vpop.f32.mrf.mxu0 }
 0x1da   :  { %v778_v58 = vadd.f32 %v1165_v56, %v777_v57 }
 0x1dc   :  { %781 = vst [vmem:[#allocation5] sm:$0xff] %v778_v58 }
 0x1dd   :  { %792 = dma.vmem_to_hbm [thread:$0]  %s788_s26, 128, %s790_s5, [#allocation4]  }
 0x1e1   :  { %v779_v59 = vpop.f32.mrf.mxu0 }
 0x1e2   :  { %1216 = dma.done.wait [#allocation4], 128  }
 0x1e3   :  { %1217 = vsyncadd [#allocation4], 4294967168 }
 0x1e4   :  { %797 = vsyncpa [#allocation3], 1 }
 0x1e5   :  { %798 = vsyncpa [#allocation4], 1 }

</bundles_post_ra>
